<compile_context>
chip_gen: v5e
topology: v5e:2x2
jax: 0.10.0
libtpu: 0.0.40
codegen_flags: <defaults>
</compile_context>

<pallas_src>
import functools

import jax
import jax.numpy as jnp
from jax import lax
from jax.experimental import pallas as pl
from jax.experimental.pallas import tpu as pltpu

N_EMBD = 32


def _heads_kernel(x_ref, wqkv_ref, o_ref, *, n_heads, head_size):
    # x_ref:    (T, C) bf16                -- one sequence (grid axis is the batch)
    # wqkv_ref: (C, 3*n_heads*head_size) bf16, layout [Q_heads | K_heads | V_heads];
    #           the 1/sqrt(C) score scale is pre-folded into the Q columns.
    # o_ref:    (T, n_heads*head_size) f32 -- lane-dense when n_heads*head_size >= 128
    x = x_ref[...]
    w = wqkv_ref[...]
    T = x.shape[0]
    H = head_size
    NHH = n_heads * H

    # Fused QKV projection for all heads: one MXU push, f32 accumulation.
    qkv = jnp.dot(x, w, preferred_element_type=jnp.float32)          # (T, 3*NHH) f32

    # Plain causal mask from 1-D iotas (batch separation handled by the grid, so no
    # integer divide and no full-size i32 iota transients).
    rows = lax.broadcasted_iota(jnp.int32, (T, 1), 0)
    cols = lax.broadcasted_iota(jnp.int32, (1, T), 1)
    keep = cols <= rows                                               # (T, T) bool

    outs = []
    for h in range(n_heads):                     # static unroll; n_heads is small
        q = qkv[:, h * H:(h + 1) * H]            # scale already folded into weight
        k = qkv[:, NHH + h * H:NHH + (h + 1) * H]
        v = qkv[:, 2 * NHH + h * H:2 * NHH + (h + 1) * H]

        # Scores: contract the head dim directly (no k.T materialization).
        scores = lax.dot_general(
            q.astype(x.dtype), k.astype(x.dtype),
            dimension_numbers=(((1,), (1,)), ((), ())),
            preferred_element_type=jnp.float32)                       # (T, T) f32
        # -1e30 (not -inf): identical for the causal mask, NaN-safe if ever reused
        # with fully-masked padding rows.
        scores = jnp.where(keep, scores, -1e30)

        # Numerically-stable softmax in f32; normalization via the EUP reciprocal.
        m = jnp.max(scores, axis=-1, keepdims=True)
        p = jnp.exp(scores - m)
        denom = jnp.sum(p, axis=-1, keepdims=True)
        weights = p * pl.reciprocal(denom, approx=True)

        outs.append(jnp.dot(weights.astype(x.dtype), v.astype(x.dtype),
                            preferred_element_type=jnp.float32))      # (T, H) f32

    # Single lane-dense store of all heads at once.
    out = outs[0] if n_heads == 1 else jnp.concatenate(outs, axis=-1)
    o_ref[...] = out.astype(o_ref.dtype)


def fuse_head_params(wq_list, wk_list, wv_list, *, compute_dtype=jnp.bfloat16):
    """Init-time weight fusion.

    wq_list/wk_list/wv_list: per-head (C, H) weights (nn.Linear weights, pre-transposed).
    Returns the fused (C, 3*n_heads*H) weight with the 1/sqrt(C) score scale folded
    into the Q columns, cast to the MXU compute dtype.  Do this ONCE, not per forward.
    """
    C = wq_list[0].shape[0]
    scale = 1.0 / (C ** 0.5)          # NOTE: sqrt(N_EMBD), matching the PyTorch module
    wq = jnp.concatenate([w * scale for w in wq_list], axis=1)
    wk = jnp.concatenate(list(wk_list), axis=1)
    wv = jnp.concatenate(list(wv_list), axis=1)
    return jnp.concatenate([wq, wk, wv], axis=1).astype(compute_dtype)


def heads_forward(x, wqkv, *, n_heads, head_size, compute_dtype=jnp.bfloat16):
    """x: (B, T, C) f32; wqkv: fused (C, 3*n_heads*head_size) weight from fuse_head_params.

    Returns (B, T, n_heads*head_size) f32: each head's output is the exact eval-mode
    `Head` forward, concatenated along the last axis.
    """
    B, T, C = x.shape
    NHH = n_heads * head_size
    x2d = x.reshape(B * T, C).astype(compute_dtype)

    kernel = functools.partial(_heads_kernel, n_heads=n_heads, head_size=head_size)

    out2d = pl.pallas_call(
        kernel,
        out_shape=jax.ShapeDtypeStruct((B * T, NHH), jnp.float32),
        grid_spec=pltpu.PrefetchScalarGridSpec(
            num_scalar_prefetch=0,
            grid=(B,),                                  # per-sequence steps: pipelined DMA,
            in_specs=[                                  # v7x 2-TC sharding via "parallel"
                pl.BlockSpec((T, C), lambda b: (b, 0)),
                pl.BlockSpec((C, 3 * NHH), lambda b: (0, 0)),   # weight stays resident
            ],
            out_specs=pl.BlockSpec((T, NHH), lambda b: (b, 0)),
        ),
        compiler_params=pltpu.CompilerParams(
            dimension_semantics=("parallel",)),
    )(x2d, wqkv)

    return out2d.reshape(B, T, NHH)


def head_forward(x, wk, wq, wv):
    """Exact single `Head` module forward (eval mode): x (B,T,C), wk/wq/wv (C,H)."""
    wqkv = fuse_head_params([wq], [wk], [wv])   # in a real model: fuse once at init
    out = heads_forward(x, wqkv, n_heads=1, head_size=wk.shape[1])
    return out.astype(x.dtype)


def reference_forward(x, wk, wq, wv):
    """Pure-JAX f32 reference mirroring the PyTorch forward (eval mode)."""
    B, T, C = x.shape
    k = x @ wk
    q = x @ wq
    v = x @ wv
    w = (q @ jnp.swapaxes(k, -2, -1)) / (C ** 0.5)
    mask = jnp.tril(jnp.ones((T, T), dtype=bool))
    w = jnp.where(mask, w, -jnp.inf)
    w = jax.nn.softmax(w, axis=-1)
    return w @ v


if __name__ == "__main__":
    key = jax.random.PRNGKey(0)
    B, T, C = 2, 8, N_EMBD
    head_size = 16
    n_heads = 8                      # fused configuration: output lane dim = 128

    keys = jax.random.split(key, 1 + 3 * n_heads)
    x = jax.random.normal(keys[0], (B, T, C), dtype=jnp.float32)

    # deterministic nn.Linear-style init: U(-1/sqrt(C), 1/sqrt(C)), stored as (C, H)
    bound = 1.0 / (C ** 0.5)
    wks, wqs, wvs = [], [], []
    for h in range(n_heads):
        wks.append(jax.random.uniform(keys[1 + 3 * h + 0], (C, head_size),
                                      jnp.float32, -bound, bound))
        wqs.append(jax.random.uniform(keys[1 + 3 * h + 1], (C, head_size),
                                      jnp.float32, -bound, bound))
        wvs.append(jax.random.uniform(keys[1 + 3 * h + 2], (C, head_size),
                                      jnp.float32, -bound, bound))

    # 1) Exact single-`Head` module semantics.
    out1 = jax.block_until_ready(head_forward(x, wks[0], wqs[0], wvs[0]))
    ref1 = reference_forward(x, wks[0], wqs[0], wvs[0])
    assert out1.shape == (B, T, head_size)
    assert jnp.allclose(out1, ref1, atol=2e-2, rtol=2e-2), "single-head mismatch"

    # 2) Fused 8-head configuration (lane-dense output, init-time weight fusion).
    wqkv = fuse_head_params(wqs, wks, wvs)
    out8 = jax.block_until_ready(
        heads_forward(x, wqkv, n_heads=n_heads, head_size=head_size))
    assert out8.shape == (B, T, n_heads * head_size)
    for h in range(n_heads):
        refh = reference_forward(x, wks[h], wqs[h], wvs[h])
        got = out8[..., h * head_size:(h + 1) * head_size]
        assert jnp.allclose(got, refh, atol=2e-2, rtol=2e-2), f"head {h} mismatch"

    print("KERNEL_OK")
</pallas_src>

<mosaic_0001>
module attributes {stable_mosaic.version = 11 : i64} {
  func.func @_heads_kernel(%arg0: i32, %arg1: memref<8x32xbf16, #tpu.memory_space<vmem>>, %arg2: memref<32x48xbf16, #tpu.memory_space<vmem>>, %arg3: memref<8x16xf32, #tpu.memory_space<vmem>>) attributes {dimension_semantics = [#tpu.dimension_semantics<parallel>], iteration_bounds = array<i64: 2>, scalar_prefetch = 0 : i64, scratch_operands = 0 : i64, tpu.core_type = #tpu.core_type<tc>, window_params = [{transform_indices = @transform_0, window_bounds = array<i64: 8, 32>}, {pipeline_mode = #tpu.pipeline_mode<synchronous>, transform_indices = @transform_1, window_bounds = array<i64: 32, 48>}, {transform_indices = @transform_2, window_bounds = array<i64: 8, 16>}]} {
    %c0 = arith.constant 0 : index
    %c0_0 = arith.constant 0 : index
    %0 = vector.load %arg1[%c0, %c0_0] : memref<8x32xbf16, #tpu.memory_space<vmem>>, vector<8x32xbf16>
    %c0_1 = arith.constant 0 : index
    %c0_2 = arith.constant 0 : index
    %1 = vector.load %arg2[%c0_1, %c0_2] : memref<32x48xbf16, #tpu.memory_space<vmem>>, vector<32x48xbf16>
    %cst = arith.constant dense<0.000000e+00> : vector<8x48xf32>
    %2 = tpu.matmul %0, %1, %cst {dimension_numbers = #tpu.dot_dimension_numbers<[1], [0], [0], [1], [0, 0, 1, 1], [], []>} : vector<8x32xbf16>, vector<32x48xbf16>, vector<8x48xf32> -> vector<8x48xf32>
    %3 = tpu.iota {dimensions = array<i32: 0>} : vector<8x1xi32>
    %4 = tpu.iota {dimensions = array<i32: 1>} : vector<1x8xi32>
    %5 = vector.broadcast %4 : vector<1x8xi32> to vector<8x8xi32>
    %6 = vector.broadcast %3 : vector<8x1xi32> to vector<8x8xi32>
    %7 = arith.cmpi sle, %5, %6 : vector<8x8xi32>
    %8 = vector.extract_strided_slice %2 {offsets = [0, 0], sizes = [8, 16], strides = [1, 1]} : vector<8x48xf32> to vector<8x16xf32>
    %9 = vector.extract_strided_slice %2 {offsets = [0, 16], sizes = [8, 16], strides = [1, 1]} : vector<8x48xf32> to vector<8x16xf32>
    %10 = vector.extract_strided_slice %2 {offsets = [0, 32], sizes = [8, 16], strides = [1, 1]} : vector<8x48xf32> to vector<8x16xf32>
    %11 = arith.truncf %8 : vector<8x16xf32> to vector<8x16xbf16>
    %12 = arith.truncf %9 : vector<8x16xf32> to vector<8x16xbf16>
    %cst_3 = arith.constant dense<0.000000e+00> : vector<8x8xf32>
    %13 = tpu.matmul %11, %12, %cst_3 {dimension_numbers = #tpu.dot_dimension_numbers<[1], [1], [0], [0], [0, 0, 1, 0], [], []>} : vector<8x16xbf16>, vector<8x16xbf16>, vector<8x8xf32> -> vector<8x8xf32>
    %cst_4 = arith.constant -1.000000e+30 : f32
    %14 = vector.broadcast %cst_4 : f32 to vector<8x8xf32>
    %15 = arith.select %7, %13, %14 : vector<8x8xi1>, vector<8x8xf32>
    %cst_5 = arith.constant dense<0xFF800000> : vector<8xf32>
    %16 = vector.multi_reduction <maximumf>, %15, %cst_5 [1] : vector<8x8xf32> to vector<8xf32>
    %17 = vector.shape_cast %16 : vector<8xf32> to vector<8x1xf32>
    %18 = vector.broadcast %17 : vector<8x1xf32> to vector<8x8xf32>
    %19 = arith.subf %15, %18 : vector<8x8xf32>
    %20 = math.exp %19 : vector<8x8xf32>
    %cst_6 = arith.constant dense<0.000000e+00> : vector<8xf32>
    %21 = vector.multi_reduction <add>, %20, %cst_6 [1] : vector<8x8xf32> to vector<8xf32>
    %22 = vector.shape_cast %21 : vector<8xf32> to vector<8x1xf32>
    %23 = tpu.reciprocal %22 {approx = true} : vector<8x1xf32> -> vector<8x1xf32>
    %24 = vector.broadcast %23 : vector<8x1xf32> to vector<8x8xf32>
    %25 = arith.mulf %20, %24 : vector<8x8xf32>
    %26 = arith.truncf %25 : vector<8x8xf32> to vector<8x8xbf16>
    %27 = arith.truncf %10 : vector<8x16xf32> to vector<8x16xbf16>
    %cst_7 = arith.constant dense<0.000000e+00> : vector<8x16xf32>
    %28 = tpu.matmul %26, %27, %cst_7 {dimension_numbers = #tpu.dot_dimension_numbers<[1], [0], [0], [1], [0, 0, 1, 1], [], []>} : vector<8x8xbf16>, vector<8x16xbf16>, vector<8x16xf32> -> vector<8x16xf32>
    %c0_8 = arith.constant 0 : index
    %c0_9 = arith.constant 0 : index
    %29 = vector.load %arg3[%c0_8, %c0_9] : memref<8x16xf32, #tpu.memory_space<vmem>>, vector<8x16xf32>
    tpu.vector_store %arg3[%c0_8, %c0_9], %28 {strides = array<i32>} : memref<8x16xf32, #tpu.memory_space<vmem>>, vector<8x16xf32>,
    return
  }
  func.func @transform_0(%arg0: i32) -> (i32, i32) {
    %c0_i32 = arith.constant 0 : i32
    %c0_i32_0 = arith.constant 0 : i32
    return %arg0, %c0_i32 : i32, i32
  }
  func.func @transform_1(%arg0: i32) -> (i32, i32) {
    %c0_i32 = arith.constant 0 : i32
    %c0_i32_0 = arith.constant 0 : i32
    %c0_i32_1 = arith.constant 0 : i32
    return %c0_i32, %c0_i32_0 : i32, i32
  }
  func.func @transform_2(%arg0: i32) -> (i32, i32) {
    %c0_i32 = arith.constant 0 : i32
    %c0_i32_0 = arith.constant 0 : i32
    return %arg0, %c0_i32 : i32, i32
  }
}

</mosaic_0001>

<bundles_post_ra>
// kernel: tpu_custom_call.1
= control target key start
LH: loop header
LB: loop body
LE: loop exit
PB: predicated region body
PF: predicated region fallthrough
CT: control target
= control target key end

     0   :  { %7 = vsyncpa [#allocation3], 0  ;;  %s762_s0 = inlined_call_operand.hbm [shape: bf16[16,32], index: 0, kind: input, shape index: {}]   ;;  %s763_s1 = inlined_call_operand.hbm [shape: bf16[32,48], index: 1, kind: input, shape index: {}]   ;;  %s764_s2 = inlined_call_operand.hbm [shape: f32[16,16], index: 2, kind: output, shape index: {}]  }
   0x1   :  { %9 = vsyncpa [#allocation3 + $0x1], 0 }
   0x2   :  { %10 = vsyncpa [#allocation6], 0 }
   0x3   :  { %11 = vsyncpa [#allocation4], 0 }
   0x4   :  { %13 = vsyncpa [#allocation4 + $0x1], 0  ;;  %s619_s9 = smov 0   ;;  %s621_s10 = smov 0  }
   0x5   :  { %s623_s11 = smov 0   ;;  %s625_s12 = smov 0  }
   0x6 LB: > { %s108_s15 = sshll.u32 %s763_s1, 4  ;;  %s643_s16 = sadd.s32 4294967295, %s597_s12   ;;  %s597_s12 = sphi %s625_s12, %s774_s12   ;;  %s593_s11 = sphi %s623_s11, %s773_s11   ;;  %s589_s10 = sphi %s621_s10, %s772_s10   ;;  %s585_s9 = sphi %s619_s9, %s771_s9   ;;  %s109_s15 = int_to_ptr.hbm [resolvable:$true] %s108_s15 }
   0x7   : > { %p376_p0 = scmp.ge.s32.totalorder %s597_s12, 1  ;;  %p40_p1 = scmp.eq.s32.totalorder %s643_s16, 0 }
   0x8   : > { %p97_p2 = scmp.lt.s32.totalorder %s597_s12, 3  ;;  %s599_s18 = smov [#allocation5]  }
   0x9   : > { %s110_s19 = sshll.u32 %s599_s18, 4  ;;  %s600_s20 = smov 64   ;;  %s111_s19 = int_to_ptr.vmem [resolvable:$true] %s110_s19 }
   0xa   : > { %p648_p3 = pnand %p376_p0, %p97_p2  ;;  %s601_s21 = smov 4  }
   0xb   : > { %s375_s22 = sadd.s32 4294967294, %s597_s12   ;;  %s659_s23 = sadd.s32 1, %s597_s12  }
   0xc   : > { %p410_p4 = pneg %p648_p3  ;;  %s26_s24 = sadd.s32 1, %s593_s11 }
   0xd   : > { %s23_s25 = ssub.s32 %s597_s12, %s659_s23  ;;  %p33_p7 = scmp.ne.s32.totalorder %s593_s11, %s589_s10 }
   0xe   : > { %p411_p6 = pnand %p410_p4, %p40_p1  ;;  %p24_p8 = scmp.eq.s32.totalorder %s23_s25, 0 }
   0xf   : > { %p34_p9 = scmp.eq.s32.totalorder %s597_s12, 0  ;;  %p39_p10 = scmp.ne.s32.totalorder %s589_s10, %s585_s9 }
  0x10   : > { %413 = dma.hbm_to_vmem [thread:$0]  (!%p411_p6), %s109_s15, 256, %s111_s19, [#allocation6], %s600_s20, %s600_s20, %s601_s21  }
  0x11   : > { %p84_p11 = scmp.eq.s32.totalorder %s643_s16, 1  ;;  %p675_p12 = por %p40_p1, %p39_p10 }
  0x12   : > { %s671_s26 = scalar_select %p24_p8, %s593_s11, %s26_s24  }
  0x13   : > { %p679_p13 = por %p84_p11, %p33_p7  ;;  %p90_p0 = scmp.eq.s32.totalorder %s375_s22, 1 }
  0x14   : > { %p35_p2 = por %p34_p9, %p33_p7  ;;  %s124_s29 = sand.u32 1, %s593_s11  }
  0x15   : > { %p684_p4 = por %p90_p0, %p39_p10  ;;  %p423_p6 = scmp.lt.s32.totalorder %s597_s12, 2 }
  0x16   : > { %s379_s3 = sshll.u32 %s124_s29, 2  ;;  %s380_s4 = sshll.u32 %s597_s12, 2 }
  0x17   : > { %s132_s7 = scalar_lea.hbm %s762_s0, %s380_s4  ;;  %s128_s13 = scalar_lea.vmem [#allocation2], %s379_s3 }
  0x18   : > { %s134_s8 = sshll.u32 %s132_s7, 4  ;;  %s136_s14 = sshll.u32 %s128_s13, 4  ;;  %s135_s8 = int_to_ptr.hbm [resolvable:$true] %s134_s8  ;;  %s137_s14 = int_to_ptr.vmem [resolvable:$true] %s136_s14 }
  0x19   : > { %p693_p8 = pnand %p423_p6, %p35_p2  ;;  %s125_s18 = scalar_lea.sflag [#allocation3], %s124_s29 }
  0x1a   : > { %s497_s19 = sshra.s32 %s135_s8, 4  ;;  %s504_s24 = scalar_lea.hbm %s762_s0, 8  ;;  %s498_s19 = int_to_ptr.hbm [resolvable:$true] %s497_s19 }
  0x1b   : > { %s499_s20 = scalar_lea.hbm %s498_s19, 4  ;;  %p501_p9 = pneg %p693_p8 }
  0x1c   : > { %p500_p7 = scmp.ne.s32.totalorder %s498_s19, %s499_s20  ;;  %p505_p0 = scmp.lt.s32.totalorder %s498_s19, %s762_s0 }
  0x1d   : > { %p506_p2 = scmp.lt.s32.totalorder %s504_s24, %s499_s20 }
  0x1e   : > { %p502_p10 = pnand %p501_p9, %p500_p7 }
  0x1f   : > { %p507_p6 = por %p506_p2, %p505_p0 }
  0x20   : > { %p503_p11 = pneg %p502_p10 }
  0x22   : > { %p508_p5 = pnand %p507_p6, %p503_p11 }
  0x24   : > { %511 = shalt.err (!%p508_p5)
}
  0x25   : > { %417 = dma.hbm_to_vmem [thread:$0]  (!%p693_p8), %s135_s8, 64, %s137_s14, %s125_s18  }
  0x26   : > { %145 = sbr.rel (%p648_p3) target bundleno = 845 (0x34d), region = 28  ;;  %s710_s29 = sand.u32 (!%p648_p3), 1, %s589_s10  }
  0x27   : > { %s382_s4 = sshll.u32 (!%p648_p3), %s710_s29, 2  ;;  %s148_s5 = scalar_lea.sflag (!%p648_p3), [#allocation3], %s710_s29 }
  0x28   : > { %s151_s6 = scalar_lea.vmem (!%p648_p3), [#allocation2], %s382_s4 }
  0x2b   : > { %572 = dma.done.wait (%p675_p12), %s148_s5, 64  }
  0x2c   : > { %574 = vsyncadd (%p675_p12), %s148_s5, 4294967232 }
  0x2d   : > { %576 = dma.done.wait (%p40_p1), [#allocation6], 256  }
  0x2e   : > { %578 = vsyncadd (%p40_p1), [#allocation6], 4294967040  ;;  %v401_v0 = vld [vmem:[#allocation5 + $0x8] sm:$0xff]  ;;  %v400_v1 = vld [vmem:[#allocation5] sm:$0xff]  ;;  %vm196_vm0 = vcmask 261120   ;;  %s602_s17 = smov 112   ;;  %v213_v8 = vlaneseq }
  0x2f   : > { %206 = vmatpush.bf16.msra.mxu0 %v401_v0  ;;  %v179_v2 = vld [vmem:[%s151_s6] sm:$0xf]  ;;  %vm222_vm1 = vcmask 130048   ;;  %vm243_vm3 = vcmask 64512   ;;  %s603_s27 = smov 96   ;;  %vm261_vm4 = vcmask 1043456  }
  0x30   : > { %v214_v9 = vshrl.u32 %v213_v8, 7  ;;  %v216_v10 = vand.u32 127, %v213_v8  ;;  %s397_s7 = sshll.u32 %s643_s16, 3  ;;  %s384_s8 = sshll.u32 %s710_s29, 3 }
  0x31   : > { %s290_s15 = scalar_lea.hbm %s764_s2, %s397_s7  ;;  %s177_s18 = scalar_lea.vmem [#allocation7], %s384_s8 }
  0x32   : > { %vm217_vm2 = vcmp.le.s32.totalorder %v216_v10, %v214_v9  ;;  %s292_s19 = sshll.u32 %s177_s18, 4  ;;  %s294_s20 = sshll.u32 %s290_s15, 4  ;;  %s293_s19 = int_to_ptr.vmem [resolvable:$true] %s292_s19  ;;  %s295_s20 = int_to_ptr.hbm [resolvable:$true] %s294_s20 }
  0x33   : > { %207 = vmatpush.bf16.msra.mxu0 %v400_v1  ;;  %s280_s21 = scalar_lea.sflag [#allocation4], %s710_s29  ;;  %s541_s22 = sshra.s32 %s295_s20, 4  ;;  %s542_s22 = int_to_ptr.hbm [resolvable:$true] %s541_s22 }
  0x34   : > { %s543_s24 = scalar_lea.hbm %s542_s22, 8  ;;  %s547_s3 = scalar_lea.hbm %s764_s2, 16 }
  0x35   : > { %p544_p1 = scmp.ne.s32.totalorder %s542_s22, %s543_s24  ;;  %p548_p12 = scmp.lt.s32.totalorder %s542_s22, %s764_s2 }
  0x36   : > { %393 = vmatmul.msk.bf16.vlgmr.msra.gmra.mxu0 %vm196_vm0, %v179_v2  ;;  %p549_p8 = scmp.lt.s32.totalorder %s547_s3, %s543_s24 }
  0x37   : > { %p545_p3 = pnand %p544_p1, %p679_p13 }
  0x38   : > { %p550_p7 = por %p549_p8, %p548_p12 }
  0x39   : > { %p546_p5 = pneg %p545_p3 }
  0x3b   : > { %p551_p9 = pnand %p550_p7, %p546_p5 }
  0xb3   : > { %v209_v3 = vpop.f32.mrf.mxu0 }
  0xb4   : > { %v218_v4 = vpack.c.bf16 %v209_v3, %v209_v3 }
  0xb6   : > { %220 = vrot.lane.b32.xlu0 %v218_v4, %s602_s17 }
  0xbb   : > { %v211_v5 = vpop.f32.mrf.mxu0 }
 0x128   : > { %v221_v6 = vpop.permute.xlu0 %220 }
 0x129   : > { %v227_v7 = vsel %vm222_vm1, %v221_v6, 0 }
 0x12a   : > { %236 = vmatpush.bf16.xpose.msra.mxu1 %v227_v7 }
 0x131   : > { %394 = vmatmul.msk.bf16.vlgmr.msra.gmra.mxu1 %vm222_vm1, %v218_v4 }
 0x1ae   : > { %v238_v11 = vpop.f32.mrf.mxu1 }
 0x1af   : > { %v242_v12 = vsel %vm217_vm2, %v238_v11, -1e+30 }
 0x1b0   : > { %v244_v13 = vsel %vm243_vm3, %v242_v12, -inf }
 0x1b1   : > { %245 = vmax.xlane.f32.xlu0 %v244_v13 }
 0x1b6   : > { %v240_v14 = vpop.f32.mrf.mxu1 }
 0x224   : > { %v246_v15 = vpop.xlane.xlu0 %245 }
 0x225   : > { %v247_v16 = vsub.f32 %v242_v12, %v246_v15 }
 0x227   : > { %v248_v17 = vmul.f32 1.442695, %v247_v16 }
 0x229   : > { %463 = vpow2.f32 %v248_v17 }
 0x22f   : > { %v464_v18 = vpop.eup %463 }
 0x230   : > { %v250_v19 = vsel %vm243_vm3, %v464_v18, 0.0 }
 0x231   : > { %251 = vadd.xlane.f32.xlu1 %v250_v19 }
 0x24a   : > { %256 = vrot.lane.b32.xlu1 %v218_v4, %s603_s27 }
 0x2a4   : > { %v252_v20 = vpop.xlane.xlu1 %251 }
 0x2a5   : > { %465 = vrcp.f32 %v252_v20 }
 0x2ab   : > { %v466_v21 = vpop.eup %465 }
 0x2ac   : > { %v254_v22 = vmul.f32 %v466_v21, %v464_v18 }
 0x2ae   : > { %v255_v25 = vpack.c.bf16 %v254_v22, %v254_v22 }
 0x2bc   : > { %v257_v23 = vpop.permute.xlu1 %256 }
 0x2bd   : > { %v263_v24 = vsel %vm261_vm4, %v257_v23, 0 }
 0x2be   : > { %272 = vmatpush.bf16.msra.mxu2 %v263_v24 }
 0x2c1   : > { %395 = vmatmul.msk.bf16.vlgmr.msra.gmra.mxu2 %vm243_vm3, %v255_v25 }
 0x344   : > { %v274_v26 = vpop.f32.mrf.mxu2 }
 0x345   : > { %278 = vst.msk [vmem:[%s177_s18] sm:$0xff] %vm222_vm1, %v274_v26 }
 0x346   : > { %554 = shalt.err (!%p551_p9)
}
 0x347   : > { %408 = dma.vmem_to_hbm [thread:$0]  (%p679_p13), %s293_s19, 128, %s295_s20, %s280_s21  }
 0x34c   : > { %v276_v27 = vpop.f32.mrf.mxu2 }
 0x34d PF: > { %s306_s29 = sand.u32 1, %s585_s9   ;;  %p770_p10 = scmp.ge.s32.totalorder %s597_s12, 2 }
 0x34e   : > { %s307_s6 = scalar_lea.sflag [#allocation4], %s306_s29 }
 0x34f   : > { %p419_p11 = pnand %p770_p10, %p684_p4 }
 0x351   : > { %p420_p0 = pneg %p419_p11 }
 0x353   : > { %580 = dma.done.wait (%p420_p0), %s307_s6, 128  }
 0x354   : > { %582 = vsyncadd (%p420_p0), %s307_s6, 4294967168  ;;  %p16_p2 = scmp.ge.s32.totalorder %s659_s23, 4   ;;  %s771_s9 = smov %s589_s10 }
 0x355   : > { %s772_s10 = smov %s593_s11  ;;  %s773_s11 = smov %s671_s26 }
 0x356   : > { %s774_s12 = smov %s659_s23  ;;  %18 = sbr.rel (!%p16_p2) target bundleno = 6 (0x6), region = 77 }
 0x35b   :  { %313 = vsyncpa [#allocation3], 1 }
 0x35c   :  { %315 = vsyncpa [#allocation3 + $0x1], 1 }
 0x35d   :  { %316 = vsyncpa [#allocation6], 1 }
 0x35e   :  { %317 = vsyncpa [#allocation4], 1 }
 0x35f   :  { %319 = vsyncpa [#allocation4 + $0x1], 1 }

</bundles_post_ra>
